<compile_context>
chip_gen: v7x
topology: tpu7x:2x2x1
jax: 0.10.0
libtpu: 0.0.40
codegen_flags: <defaults>
</compile_context>

<pallas_src>
import functools

import jax
import jax.numpy as jnp
from jax.experimental import pallas as pl
from jax.experimental.pallas import tpu as pltpu

LANE = 128


def _round_up(x, m):
    return ((x + m - 1) // m) * m


def _text_cnn_kernel(kernel_sizes, seq_len, lr, cp,
                     emb_ref, wconv_ref, bconv_ref, wfc_ref, bfc_ref, out_ref):
    """Per batch tile: per-conv im2col matmul -> max-pool -> bias/ReLU -> FC."""
    tb, _, e = emb_ref.shape
    emb = emb_ref[...]                                     # [tb, Lp, E] bf16
    bconv = bconv_ref[...]                                 # [n_convs, Cp] f32

    pooled = []
    for i, k in enumerate(kernel_sizes):
        # im2col: fold the k taps into the contraction dim.  Each tap is a small
        # sublane-shifted slice of the bf16 activation block; the conv accumulation
        # then happens inside the MXU instead of as post-matmul shifted adds.
        x = jnp.concatenate([emb[:, j:j + lr, :] for j in range(k)], axis=-1)
        # Collapse (tb, Lr) into one M so the MXU sees a single [tb*Lr, k*E] matmul.
        x = x.reshape(tb * lr, k * e)
        w = wconv_ref[i, :k * e, :]                        # [k*E, Cp] bf16
        y = jnp.dot(x, w, preferred_element_type=jnp.float32)   # [tb*Lr, Cp] f32
        y = y.reshape(tb, lr, cp)
        # Global max-pool over the valid output positions only.  Conv1d bias + ReLU
        # commute with the max, so they run on the pooled [tb, Cp] tensor.
        l_out = seq_len - k + 1
        p = jnp.max(y[:, :l_out, :], axis=1)               # [tb, Cp]
        pooled.append(jnp.maximum(p + bconv[i:i + 1, :], 0.0))

    hidden = jnp.concatenate(pooled, axis=1)               # [tb, n*Cp] f32
    # TODO(synk): nn.Dropout(p=0.5) treated as eval-mode identity (no RNG masking).
    logits = jnp.dot(hidden, wfc_ref[...],
                     preferred_element_type=jnp.float32) + bfc_ref[...]
    out_ref[...] = logits.astype(out_ref.dtype)


def prepare_params(params, kernel_sizes):
    """One-time conversion of PyTorch-layout f32 params into kernel layout."""
    emb_tbl = params["embedding"]
    embed_dim = emb_tbl.shape[1]
    out_channels = params[f"conv{kernel_sizes[0]}_b"].shape[0]
    num_class = params["fc_b"].shape[0]
    n = len(kernel_sizes)
    max_k = max(kernel_sizes)
    cp = _round_up(out_channels, LANE)
    ncp = _round_up(num_class, LANE)

    # Stacked im2col conv weights: [n, max_k*E, Cp].  Rows j*E:(j+1)*E of conv i hold
    # tap j's [E, C] weights (lane-padded to Cp); rows for taps >= k_i stay zero and
    # are never read (the kernel takes a static :k*E prefix slice).
    wconv = jnp.zeros((n, max_k * embed_dim, cp), jnp.float32)
    for i, k in enumerate(kernel_sizes):
        w = params[f"conv{k}_w"]                           # [C, E, k] (PyTorch)
        w = jnp.transpose(w, (2, 1, 0)).reshape(k * embed_dim, out_channels)
        wconv = wconv.at[i, :k * embed_dim, :out_channels].set(w)

    bconv = jnp.stack(
        [jnp.pad(params[f"conv{k}_b"], (0, cp - out_channels)) for k in kernel_sizes]
    )                                                      # [n, Cp] f32

    # FC weight in [n*Cp, NCp] layout; padded channel rows / class columns are zero.
    wfc = jnp.zeros((n * cp, ncp), jnp.float32)
    for i in range(n):
        blk = params["fc_w"][:, i * out_channels:(i + 1) * out_channels].T
        wfc = wfc.at[i * cp:i * cp + out_channels, :num_class].set(blk)
    bfc = jnp.pad(params["fc_b"], (0, ncp - num_class))[None, :]   # [1, NCp]

    return {
        "emb_table": emb_tbl.astype(jnp.bfloat16),
        "wconv": wconv.astype(jnp.bfloat16),
        "bconv": bconv.astype(jnp.float32),
        "wfc": wfc.astype(jnp.float32),
        "bfc": bfc.astype(jnp.float32),
        "num_class": num_class,
        "cp": cp,
        "ncp": ncp,
    }


def _choose_batch_tile(batch, lp, lr, embed_dim, kernel_sizes, cp, resident_bytes):
    """Largest batch tile that keeps the per-step VMEM footprint within budget."""
    max_k = max(kernel_sizes)
    per_row = (4 * lp * embed_dim            # double-buffered bf16 activation block
               + 2 * lr * max_k * embed_dim  # widest bf16 im2col buffer
               + 8 * lr * cp)                # f32 matmul result (~2 live copies)
    budget = (20 << 20) - int(resident_bytes)   # headroom under the 32 MiB scoped limit
    tb = max(1, budget // max(per_row, 1))
    tb = int(min(tb, batch, 256))
    if batch >= 16:
        # Keep the batch tile a multiple of 8 (sublane-aligned output blocks) and leave
        # >= 2 grid steps so ("parallel",) can spread work over v7x's two TensorCores.
        tb = min(tb, max(8, _round_up(batch // 2, 8)))
        tb = max(8, (tb // 8) * 8)
    else:
        tb = batch
    return int(tb)


def text_cnn_forward(text, kparams, kernel_sizes):
    # Embedding lookup stays in plain JAX (gather glue); see TODO above about fusing it.
    emb = kparams["emb_table"][text]                       # [B, L, E] bf16
    batch, seq_len, embed_dim = emb.shape
    max_k = max(kernel_sizes)
    assert seq_len >= max_k, "seq_len must be >= max(kernel_sizes)"
    cp, ncp, num_class = kparams["cp"], kparams["ncp"], kparams["num_class"]

    # Pad the time axis so every im2col tap is a uniform slice of Lr rows and the
    # (tb*Lr, k*E) reshape stays sublane-tidy.  Padding is zeros; positions past the
    # valid conv length are excluded from the max by a static prefix slice in-kernel.
    lr = _round_up(seq_len, 8)
    lp = lr + max_k - 1
    emb = jnp.pad(emb, ((0, 0), (0, lp - seq_len), (0, 0)))

    resident = 2 * sum(int(kparams[k].size) * kparams[k].dtype.itemsize
                       for k in ("wconv", "bconv", "wfc", "bfc"))
    tb = _choose_batch_tile(batch, lp, lr, embed_dim, kernel_sizes, cp, resident)
    grid = (pl.cdiv(batch, tb),)
    # Note: when batch % tb != 0 the trailing step reads Pallas-clipped/unspecified
    # activation rows; rows are independent and out-of-range output writes are dropped,
    # so valid rows are unaffected.

    kernel = functools.partial(_text_cnn_kernel, tuple(kernel_sizes), seq_len, lr, cp)

    out = pl.pallas_call(
        kernel,
        out_shape=jax.ShapeDtypeStruct((batch, ncp), jnp.float32),
        grid=grid,
        in_specs=[
            pl.BlockSpec((tb, lp, embed_dim), lambda i: (i, 0, 0)),      # activations
            pl.BlockSpec(kparams["wconv"].shape, lambda i: (0, 0, 0)),   # resident
            pl.BlockSpec(kparams["bconv"].shape, lambda i: (0, 0)),      # resident
            pl.BlockSpec(kparams["wfc"].shape, lambda i: (0, 0)),        # resident
            pl.BlockSpec(kparams["bfc"].shape, lambda i: (0, 0)),        # resident
        ],
        out_specs=pl.BlockSpec((tb, ncp), lambda i: (i, 0)),
        compiler_params=pltpu.CompilerParams(
            dimension_semantics=("parallel",),
            vmem_limit_bytes=32 * 1024 * 1024,
        ),
    )(emb, kparams["wconv"], kparams["bconv"], kparams["wfc"], kparams["bfc"])

    return out[:, :num_class]                              # drop lane padding


def reference_forward(text, params, kernel_sizes):
    """Pure-JAX f32 reference mirroring the PyTorch forward (dropout = identity)."""
    emb = params["embedding"][text]                        # [B, L, E]
    x = jnp.transpose(emb, (0, 2, 1))                      # [B, E, L]
    pooled = []
    for k in kernel_sizes:
        w = params[f"conv{k}_w"]                           # [C, E, k]
        b = params[f"conv{k}_b"]
        y = jax.lax.conv_general_dilated(
            x, w, window_strides=(1,), padding="VALID",
            dimension_numbers=("NCH", "OIH", "NCH"),
        )
        y = jax.nn.relu(y + b[None, :, None])
        pooled.append(jnp.max(y, axis=-1))                 # [B, C]
    hidden = jnp.concatenate(pooled, axis=1)
    return hidden @ params["fc_w"].T + params["fc_b"]


def init_params(key, vocab_size, embed_dim, out_channels, kernel_sizes, num_class):
    keys = jax.random.split(key, 2 + 2 * len(kernel_sizes) + 2)
    params = {
        "embedding": 0.1 * jax.random.normal(keys[0], (vocab_size, embed_dim), jnp.float32)
    }
    for i, k in enumerate(kernel_sizes):
        params[f"conv{k}_w"] = 0.1 * jax.random.normal(
            keys[1 + 2 * i], (out_channels, embed_dim, k), jnp.float32
        )
        params[f"conv{k}_b"] = 0.1 * jax.random.normal(
            keys[2 + 2 * i], (out_channels,), jnp.float32
        )
    params["fc_w"] = 0.1 * jax.random.normal(
        keys[-2], (num_class, out_channels * len(kernel_sizes)), jnp.float32
    )
    params["fc_b"] = 0.1 * jax.random.normal(keys[-1], (num_class,), jnp.float32)
    return params


if __name__ == "__main__":
    # Small, forward-consistent shapes.
    num_class = 4
    vocab_size = 50
    embed_dim = 32
    out_channels = 16
    kernel_sizes = (3, 4, 5)

    root = jax.random.PRNGKey(0)
    k_params, k_text1, k_text2 = jax.random.split(root, 3)
    params = init_params(k_params, vocab_size, embed_dim, out_channels, kernel_sizes,
                         num_class)
    # One-time layout / bf16 conversion (kept out of the per-call hot path).
    kparams = prepare_params(params, kernel_sizes)

    # Case 1: tiny batch (single grid step, tb = batch).
    batch, seq_len = 2, 16
    text = jax.random.randint(k_text1, (batch, seq_len), 0, vocab_size, dtype=jnp.int32)
    out = jax.block_until_ready(text_cnn_forward(text, kparams, kernel_sizes))
    ref = reference_forward(text, params, kernel_sizes)
    assert out.shape == (batch, num_class)
    # Tolerance accounts for bf16 weights/activations (f32 accumulation) vs f32 ref.
    assert jnp.allclose(out, ref, atol=3e-2, rtol=3e-2), (out, ref)

    # Case 2: multi-step 'parallel' grid with a partial trailing block and a
    # non-multiple-of-8 sequence length (exercises time padding + prefix-slice pooling).
    batch2, seq_len2 = 20, 13
    text2 = jax.random.randint(k_text2, (batch2, seq_len2), 0, vocab_size, dtype=jnp.int32)
    out2 = jax.block_until_ready(text_cnn_forward(text2, kparams, kernel_sizes))
    ref2 = reference_forward(text2, params, kernel_sizes)
    assert out2.shape == (batch2, num_class)
    assert jnp.allclose(out2, ref2, atol=3e-2, rtol=3e-2), (out2, ref2)

    print("KERNEL_OK")
</pallas_src>

<mosaic_0001>
module attributes {stable_mosaic.version = 11 : i64} {
  func.func @_text_cnn_kernel(%arg0: i32, %arg1: memref<2x20x32xbf16, #tpu.memory_space<vmem>>, %arg2: memref<3x160x128xbf16, #tpu.memory_space<vmem>>, %arg3: memref<3x128xf32, #tpu.memory_space<vmem>>, %arg4: memref<384x128xf32, #tpu.memory_space<vmem>>, %arg5: memref<1x128xf32, #tpu.memory_space<vmem>>, %arg6: memref<2x128xf32, #tpu.memory_space<vmem>>) attributes {dimension_semantics = [#tpu.dimension_semantics<parallel>], iteration_bounds = array<i64: 1>, scalar_prefetch = 0 : i64, scratch_operands = 0 : i64, tpu.core_type = #tpu.core_type<tc>, window_params = [{transform_indices = @transform_0, window_bounds = array<i64: 2, 20, 32>}, {pipeline_mode = #tpu.pipeline_mode<synchronous>, transform_indices = @transform_1, window_bounds = array<i64: 3, 160, 128>}, {pipeline_mode = #tpu.pipeline_mode<synchronous>, transform_indices = @transform_2, window_bounds = array<i64: 3, 128>}, {pipeline_mode = #tpu.pipeline_mode<synchronous>, transform_indices = @transform_3, window_bounds = array<i64: 384, 128>}, {pipeline_mode = #tpu.pipeline_mode<synchronous>, transform_indices = @transform_4, window_bounds = array<i64: 1, 128>}, {transform_indices = @transform_5, window_bounds = array<i64: 2, 128>}]} {
    %c0 = arith.constant 0 : index
    %c0_0 = arith.constant 0 : index
    %c0_1 = arith.constant 0 : index
    %0 = vector.load %arg1[%c0, %c0_0, %c0_1] : memref<2x20x32xbf16, #tpu.memory_space<vmem>>, vector<2x20x32xbf16>
    %c0_2 = arith.constant 0 : index
    %c0_3 = arith.constant 0 : index
    %1 = vector.load %arg3[%c0_2, %c0_3] : memref<3x128xf32, #tpu.memory_space<vmem>>, vector<3x128xf32>
    %2 = vector.extract_strided_slice %0 {offsets = [0, 0, 0], sizes = [2, 16, 32], strides = [1, 1, 1]} : vector<2x20x32xbf16> to vector<2x16x32xbf16>
    %3 = vector.extract_strided_slice %0 {offsets = [0, 1, 0], sizes = [2, 16, 32], strides = [1, 1, 1]} : vector<2x20x32xbf16> to vector<2x16x32xbf16>
    %4 = vector.extract_strided_slice %0 {offsets = [0, 2, 0], sizes = [2, 16, 32], strides = [1, 1, 1]} : vector<2x20x32xbf16> to vector<2x16x32xbf16>
    %5 = tpu.concatenate %2, %3, %4 in 2 : vector<2x16x32xbf16>, vector<2x16x32xbf16>, vector<2x16x32xbf16> -> vector<2x16x96xbf16>
    %6 = vector.shape_cast %5 : vector<2x16x96xbf16> to vector<32x96xbf16>
    %c0_4 = arith.constant 0 : index
    %c0_5 = arith.constant 0 : index
    %c0_6 = arith.constant 0 : index
    %7 = vector.load %arg2[%c0_4, %c0_5, %c0_6] : memref<3x160x128xbf16, #tpu.memory_space<vmem>>, vector<1x96x128xbf16>
    %8 = vector.shape_cast %7 : vector<1x96x128xbf16> to vector<96x128xbf16>
    %cst = arith.constant dense<0.000000e+00> : vector<32x128xf32>
    %9 = tpu.matmul %6, %8, %cst {dimension_numbers = #tpu.dot_dimension_numbers<[1], [0], [0], [1], [0, 0, 1, 1], [], []>} : vector<32x96xbf16>, vector<96x128xbf16>, vector<32x128xf32> -> vector<32x128xf32>
    %10 = vector.shape_cast %9 : vector<32x128xf32> to vector<2x16x128xf32>
    %11 = vector.extract_strided_slice %10 {offsets = [0, 0, 0], sizes = [2, 14, 128], strides = [1, 1, 1]} : vector<2x16x128xf32> to vector<2x14x128xf32>
    %cst_7 = arith.constant dense<0xFF800000> : vector<2x128xf32>
    %12 = vector.multi_reduction <maximumf>, %11, %cst_7 [1] : vector<2x14x128xf32> to vector<2x128xf32>
    %13 = vector.extract_strided_slice %1 {offsets = [0, 0], sizes = [1, 128], strides = [1, 1]} : vector<3x128xf32> to vector<1x128xf32>
    %14 = vector.broadcast %13 : vector<1x128xf32> to vector<2x128xf32>
    %15 = arith.addf %12, %14 : vector<2x128xf32>
    %cst_8 = arith.constant 0.000000e+00 : f32
    %16 = vector.broadcast %cst_8 : f32 to vector<2x128xf32>
    %17 = arith.maximumf %15, %16 : vector<2x128xf32>
    %18 = vector.extract_strided_slice %0 {offsets = [0, 0, 0], sizes = [2, 16, 32], strides = [1, 1, 1]} : vector<2x20x32xbf16> to vector<2x16x32xbf16>
    %19 = vector.extract_strided_slice %0 {offsets = [0, 1, 0], sizes = [2, 16, 32], strides = [1, 1, 1]} : vector<2x20x32xbf16> to vector<2x16x32xbf16>
    %20 = vector.extract_strided_slice %0 {offsets = [0, 2, 0], sizes = [2, 16, 32], strides = [1, 1, 1]} : vector<2x20x32xbf16> to vector<2x16x32xbf16>
    %21 = vector.extract_strided_slice %0 {offsets = [0, 3, 0], sizes = [2, 16, 32], strides = [1, 1, 1]} : vector<2x20x32xbf16> to vector<2x16x32xbf16>
    %22 = tpu.concatenate %18, %19, %20, %21 in 2 : vector<2x16x32xbf16>, vector<2x16x32xbf16>, vector<2x16x32xbf16>, vector<2x16x32xbf16> -> vector<2x16x128xbf16>
    %23 = vector.shape_cast %22 : vector<2x16x128xbf16> to vector<32x128xbf16>
    %c1 = arith.constant 1 : index
    %c0_9 = arith.constant 0 : index
    %c0_10 = arith.constant 0 : index
    %24 = vector.load %arg2[%c1, %c0_9, %c0_10] : memref<3x160x128xbf16, #tpu.memory_space<vmem>>, vector<1x128x128xbf16>
    %25 = vector.shape_cast %24 : vector<1x128x128xbf16> to vector<128x128xbf16>
    %cst_11 = arith.constant dense<0.000000e+00> : vector<32x128xf32>
    %26 = tpu.matmul %23, %25, %cst_11 {dimension_numbers = #tpu.dot_dimension_numbers<[1], [0], [0], [1], [0, 0, 1, 1], [], []>} : vector<32x128xbf16>, vector<128x128xbf16>, vector<32x128xf32> -> vector<32x128xf32>
    %27 = vector.shape_cast %26 : vector<32x128xf32> to vector<2x16x128xf32>
    %28 = vector.extract_strided_slice %27 {offsets = [0, 0, 0], sizes = [2, 13, 128], strides = [1, 1, 1]} : vector<2x16x128xf32> to vector<2x13x128xf32>
    %cst_12 = arith.constant dense<0xFF800000> : vector<2x128xf32>
    %29 = vector.multi_reduction <maximumf>, %28, %cst_12 [1] : vector<2x13x128xf32> to vector<2x128xf32>
    %30 = vector.extract_strided_slice %1 {offsets = [1, 0], sizes = [1, 128], strides = [1, 1]} : vector<3x128xf32> to vector<1x128xf32>
    %31 = vector.broadcast %30 : vector<1x128xf32> to vector<2x128xf32>
    %32 = arith.addf %29, %31 : vector<2x128xf32>
    %cst_13 = arith.constant 0.000000e+00 : f32
    %33 = vector.broadcast %cst_13 : f32 to vector<2x128xf32>
    %34 = arith.maximumf %32, %33 : vector<2x128xf32>
    %35 = vector.extract_strided_slice %0 {offsets = [0, 0, 0], sizes = [2, 16, 32], strides = [1, 1, 1]} : vector<2x20x32xbf16> to vector<2x16x32xbf16>
    %36 = vector.extract_strided_slice %0 {offsets = [0, 1, 0], sizes = [2, 16, 32], strides = [1, 1, 1]} : vector<2x20x32xbf16> to vector<2x16x32xbf16>
    %37 = vector.extract_strided_slice %0 {offsets = [0, 2, 0], sizes = [2, 16, 32], strides = [1, 1, 1]} : vector<2x20x32xbf16> to vector<2x16x32xbf16>
    %38 = vector.extract_strided_slice %0 {offsets = [0, 3, 0], sizes = [2, 16, 32], strides = [1, 1, 1]} : vector<2x20x32xbf16> to vector<2x16x32xbf16>
    %39 = vector.extract_strided_slice %0 {offsets = [0, 4, 0], sizes = [2, 16, 32], strides = [1, 1, 1]} : vector<2x20x32xbf16> to vector<2x16x32xbf16>
    %40 = tpu.concatenate %35, %36, %37, %38, %39 in 2 : vector<2x16x32xbf16>, vector<2x16x32xbf16>, vector<2x16x32xbf16>, vector<2x16x32xbf16>, vector<2x16x32xbf16> -> vector<2x16x160xbf16>
    %41 = vector.shape_cast %40 : vector<2x16x160xbf16> to vector<32x160xbf16>
    %c2 = arith.constant 2 : index
    %c0_14 = arith.constant 0 : index
    %c0_15 = arith.constant 0 : index
    %42 = vector.load %arg2[%c2, %c0_14, %c0_15] : memref<3x160x128xbf16, #tpu.memory_space<vmem>>, vector<1x160x128xbf16>
    %43 = vector.shape_cast %42 : vector<1x160x128xbf16> to vector<160x128xbf16>
    %cst_16 = arith.constant dense<0.000000e+00> : vector<32x128xf32>
    %44 = tpu.matmul %41, %43, %cst_16 {dimension_numbers = #tpu.dot_dimension_numbers<[1], [0], [0], [1], [0, 0, 1, 1], [], []>} : vector<32x160xbf16>, vector<160x128xbf16>, vector<32x128xf32> -> vector<32x128xf32>
    %45 = vector.shape_cast %44 : vector<32x128xf32> to vector<2x16x128xf32>
    %46 = vector.extract_strided_slice %45 {offsets = [0, 0, 0], sizes = [2, 12, 128], strides = [1, 1, 1]} : vector<2x16x128xf32> to vector<2x12x128xf32>
    %cst_17 = arith.constant dense<0xFF800000> : vector<2x128xf32>
    %47 = vector.multi_reduction <maximumf>, %46, %cst_17 [1] : vector<2x12x128xf32> to vector<2x128xf32>
    %48 = vector.extract_strided_slice %1 {offsets = [2, 0], sizes = [1, 128], strides = [1, 1]} : vector<3x128xf32> to vector<1x128xf32>
    %49 = vector.broadcast %48 : vector<1x128xf32> to vector<2x128xf32>
    %50 = arith.addf %47, %49 : vector<2x128xf32>
    %cst_18 = arith.constant 0.000000e+00 : f32
    %51 = vector.broadcast %cst_18 : f32 to vector<2x128xf32>
    %52 = arith.maximumf %50, %51 : vector<2x128xf32>
    %53 = tpu.concatenate %17, %34, %52 in 1 : vector<2x128xf32>, vector<2x128xf32>, vector<2x128xf32> -> vector<2x384xf32>
    %c0_19 = arith.constant 0 : index
    %c0_20 = arith.constant 0 : index
    %54 = vector.load %arg4[%c0_19, %c0_20] : memref<384x128xf32, #tpu.memory_space<vmem>>, vector<384x128xf32>
    %cst_21 = arith.constant dense<0.000000e+00> : vector<2x128xf32>
    %55 = tpu.matmul %53, %54, %cst_21 {dimension_numbers = #tpu.dot_dimension_numbers<[1], [0], [0], [1], [0, 0, 1, 1], [], []>} : vector<2x384xf32>, vector<384x128xf32>, vector<2x128xf32> -> vector<2x128xf32>
    %c0_22 = arith.constant 0 : index
    %c0_23 = arith.constant 0 : index
    %56 = vector.load %arg5[%c0_22, %c0_23] : memref<1x128xf32, #tpu.memory_space<vmem>>, vector<1x128xf32>
    %57 = vector.broadcast %56 : vector<1x128xf32> to vector<2x128xf32>
    %58 = arith.addf %55, %57 : vector<2x128xf32>
    %c0_24 = arith.constant 0 : index
    %c0_25 = arith.constant 0 : index
    %59 = vector.load %arg6[%c0_24, %c0_25] : memref<2x128xf32, #tpu.memory_space<vmem>>, vector<2x128xf32>
    tpu.vector_store %arg6[%c0_24, %c0_25], %58 {strides = array<i32>} : memref<2x128xf32, #tpu.memory_space<vmem>>, vector<2x128xf32>,
    return
  }
  func.func @transform_0(%arg0: i32) -> (i32, i32, i32) {
    %c0_i32 = arith.constant 0 : i32
    %c0_i32_0 = arith.constant 0 : i32
    %c0_i32_1 = arith.constant 0 : i32
    return %arg0, %c0_i32, %c0_i32_0 : i32, i32, i32
  }
  func.func @transform_1(%arg0: i32) -> (i32, i32, i32) {
    %c0_i32 = arith.constant 0 : i32
    %c0_i32_0 = arith.constant 0 : i32
    %c0_i32_1 = arith.constant 0 : i32
    %c0_i32_2 = arith.constant 0 : i32
    return %c0_i32, %c0_i32_0, %c0_i32_1 : i32, i32, i32
  }
  func.func @transform_2(%arg0: i32) -> (i32, i32) {
    %c0_i32 = arith.constant 0 : i32
    %c0_i32_0 = arith.constant 0 : i32
    %c0_i32_1 = arith.constant 0 : i32
    return %c0_i32, %c0_i32_0 : i32, i32
  }
  func.func @transform_3(%arg0: i32) -> (i32, i32) {
    %c0_i32 = arith.constant 0 : i32
    %c0_i32_0 = arith.constant 0 : i32
    %c0_i32_1 = arith.constant 0 : i32
    return %c0_i32, %c0_i32_0 : i32, i32
  }
  func.func @transform_4(%arg0: i32) -> (i32, i32) {
    %c0_i32 = arith.constant 0 : i32
    %c0_i32_0 = arith.constant 0 : i32
    %c0_i32_1 = arith.constant 0 : i32
    return %c0_i32, %c0_i32_0 : i32, i32
  }
  func.func @transform_5(%arg0: i32) -> (i32, i32) {
    %c0_i32 = arith.constant 0 : i32
    %c0_i32_0 = arith.constant 0 : i32
    return %arg0, %c0_i32 : i32, i32
  }
}

</mosaic_0001>

<bundles_post_ra>
// kernel: tpu_custom_call.1
= control target key start
LH: loop header
LB: loop body
LE: loop exit
PB: predicated region body
PF: predicated region fallthrough
CT: control target
= control target key end

     0   :  { %10 = vsyncpa [#allocation3], 0  ;;  %s1322_s0 = inlined_call_operand.vmem [shape: bf16[2,20,32], index: 0, kind: input, shape index: {}]   ;;  %s1323_s1 = inlined_call_operand.hbm [shape: bf16[3,160,128], index: 1, kind: input, shape index: {}]   ;;  %s1324_s2 = inlined_call_operand.vmem [shape: f32[3,128], index: 2, kind: input, shape index: {}]   ;;  %s1325_s3 = inlined_call_operand.hbm [shape: f32[384,128], index: 3, kind: input, shape index: {}]   ;;  %s1326_s4 = inlined_call_operand.vmem [shape: f32[1,128], index: 4, kind: input, shape index: {}]   ;;  %s1327_s5 = inlined_call_operand.hbm [shape: f32[2,128], index: 5, kind: output, shape index: {}]  }
   0x1   :  { %11 = vsyncpa [#allocation6], 0 }
   0x2   :  { %12 = vsyncpa [#allocation4], 0  ;;  %s1157_s18 = smov [#allocation2]   ;;  %s1085_s22 = scalar_lea.hbm %s1323_s1, 3840 }
   0x3   :  { %s20_s19 = sshll.u32 %s1157_s18, 4  ;;  %p1086_p0 = scmp.ne.s32.totalorder %s1323_s1, %s1085_s22  ;;  %s21_s19 = int_to_ptr.vmem [resolvable:$true] %s20_s19 }
   0x4   :  { %p1089_p1 = scmp.lt.u32.totalorder %s1085_s22, %s1323_s1 }
   0x6   :  { %p1091_p2 = pnand %p1089_p1, %p1086_p0 }
   0x8   :  { %1094 = shalt.err (!%p1091_p2)
}
   0x9   :  { %s1095_s27 = scalar_lea.vmem %s21_s19, 3840  ;;  %p1100_p4 = scmp.lt.s32.totalorder %s21_s19, %s21_s19 }
   0xa   :  { %p1096_p3 = scmp.ne.s32.totalorder %s21_s19, %s1095_s27  ;;  %p1101_p5 = scmp.lt.s32.totalorder %s1095_s27, %s1095_s27 }
   0xc   :  { %p1102_p6 = por %p1101_p5, %p1100_p4 }
   0xe   :  { %p1103_p7 = pnand %p1102_p6, %p1096_p3 }
  0x10   :  { %1106 = shalt.err (!%p1103_p7)
}
  0x11   :  { %s1158_s28 = smov 64   ;;  %s1159_s29 = smov 4  }
  0x12   :  { %26 = dma.hbm_to_vmem [thread:$0]  %s1323_s1, 3840, %s21_s19, [#allocation3], %s1158_s28, %s1158_s28, %s1159_s29  }
  0x13   :  { %s1160_s7 = smov [#allocation5]   ;;  %s1107_s11 = scalar_lea.hbm %s1325_s3, 6144 }
  0x14   :  { %s34_s8 = sshll.u32 %s1160_s7, 4  ;;  %p1108_p8 = scmp.ne.s32.totalorder %s1325_s3, %s1107_s11  ;;  %s35_s8 = int_to_ptr.vmem [resolvable:$true] %s34_s8 }
  0x15   :  { %p1111_p9 = scmp.lt.u32.totalorder %s1107_s11, %s1325_s3 }
  0x17   :  { %p1113_p10 = pnand %p1111_p9, %p1108_p8 }
  0x19   :  { %1116 = shalt.err (!%p1113_p10)
}
  0x1a   :  { %s1117_s16 = scalar_lea.vmem %s35_s8, 6144  ;;  %p1122_p12 = scmp.lt.s32.totalorder %s35_s8, %s35_s8 }
  0x1b   :  { %p1118_p11 = scmp.ne.s32.totalorder %s35_s8, %s1117_s16  ;;  %p1123_p13 = scmp.lt.s32.totalorder %s1117_s16, %s1117_s16 }
  0x1d   :  { %p1124_p0 = por %p1123_p13, %p1122_p12 }
  0x1f   :  { %p1125_p1 = pnand %p1124_p0, %p1118_p11 }
  0x21   :  { %1128 = shalt.err (!%p1125_p1)
}
  0x22   :  { %s1161_s1 = smov 128   ;;  %s1162_s17 = smov 8  }
  0x23   :  { %40 = dma.hbm_to_vmem [thread:$0]  %s1325_s3, 6144, %s35_s8, [#allocation6], %s1161_s1, %s1161_s1, %s1162_s17  }
  0x24   :  { %1151 = dma.done.wait [#allocation3], 3840  }
  0x25   :  { %1152 = vsyncadd [#allocation3], 4294963456 }
  0x26   :  { %1153 = dma.done.wait [#allocation6], 6144  }
  0x27   :  { %1154 = vsyncadd [#allocation6], 4294961152  ;;  %v1163_v0 = vmov 0   ;;  %vm102_vm0 = vcmask 1046528   ;;  %vm73_vm1 = vsmask.f32 7424 }
  0x28   :  { %512 = vmatprep.subr.bf16.mxu0 %v1163_v0  ;;  %v1230_v1 = vld [vmem:[%s1322_s0] sm:$0xff]   ;;  %v1235_v2 = vld [vmem:[%s1322_s0 + $0x8] ss:$0 sps:$4 sm:$0x33]   ;;  %v1240_v3 = vld [vmem:[%s1322_s0 + $0xc] sm:$0xff]   ;;  %vm225_vm3 = vcmask 1045504  }
  0x29   :  { %vm250_vm2 = vsmask.f32 6400  ;;  %v103_v4 = vrot.slane %v1230_v1, 1  ;;  %v104_v5 = vrot.slane %v1235_v2, 1  ;;  %v75_v6 = vshrl.u32 %v1230_v1, 16  ;;  %v1061_v16 = vld [vmem:[#allocation2 + $0xa0] sm:$0xff]  }
  0x2a   :  { %v77_v7 = vshll.u32 %v1230_v1, 16  ;;  %v82_v8 = vshll.u32 %v1235_v2, 16  ;;  %v1250_v9 = vld [vmem:[%s1322_s0 + $0x14] ss:$0 sps:$4 sm:$0x33]   ;;  %v106_v10 = vrot.slane %v1240_v3, 1  ;;  %513 = vmatpush1.bf16.msra.mxu0 %v1061_v16 }
  0x2b   :  { %v87_v11 = vshrl.u32 %v1240_v3, 16  ;;  %v105_v12 = vsel %vm102_vm0, %v103_v4, %v104_v5  ;;  %v89_v14 = vshll.u32 %v1240_v3, 16  ;;  %v251_v15 = vrot.slane %v75_v6, 1  ;;  %v1062_v25 = vld [vmem:[#allocation2 + $0xa8] sm:$0xff]   ;;  %514 = vmatprep.subr.bf16.mxu0 %v1163_v0  ;;  %v1064_v34 = vld [vmem:[#allocation2] sm:$0xff]   ;;  %s1164_s0 = smov 32  }
  0x2c   :  { %v79_v13 = vrot.slane %v77_v7, 1  ;;  %109 = vrot.lane.b32.xlu1 %v105_v12, %s1158_s28  ;;  %v84_v17 = vrot.slane %v82_v8, 1  ;;  %v107_v18 = vrot.slane %v1250_v9, 1  ;;  %v94_v19 = vshll.u32 %v1250_v9, 16  ;;  %v1063_v39 = vld [vmem:[#allocation2 + $0xb0] sm:$0xff]   ;;  %917 = vmatprep.subr.bf16.mxu1 %v1064_v34  ;;  %v1066_v42 = vld [vmem:[#allocation2 + $0x8] sm:$0xff]  }
  0x2d   :  { %v260_v20 = vrot.slane %v87_v11, 1  ;;  %v91_v22 = vrot.slane %v89_v14, 1  ;;  %v261_v23 = vrot.slane %v89_v14, 2  ;;  %v263_v24 = vshrl.u32 %v1250_v9, 16  ;;  %918 = vmatpush3.bf16.msra.mxu1 %v1064_v34  ;;  %s1165_s27 = smov 96   ;;  %v1068_v46 = vld [vmem:[#allocation2 + $0x10] sm:$0xff]  }
  0x2e   :  { %v80_v21 = vor.u32 %v79_v13, %v75_v6  ;;  %v108_v26 = vsel %vm102_vm0, %v106_v10, %v107_v18  ;;  %v96_v27 = vrot.slane %v94_v19, 1  ;;  %v266_v28 = vrot.slane %v94_v19, 2  ;;  %515 = vmatpush1.bf16.msra.mxu0 %v1062_v25  ;;  %v1065_v48 = vld [vmem:[#allocation2 + $0xb8] sm:$0xff]   ;;  %919 = vmatprep.subr.bf16.mxu1 %v1066_v42  ;;  %v1067_v52 = vld [vmem:[#allocation2 + $0xc0] sm:$0xff]   ;;  %v1069_v54 = vld [vmem:[#allocation2 + $0xc8] sm:$0xff]   ;;  %s1169_s6 = smov [#allocation7]  }
  0x2f   :  { %v252_v29 = vrot.slane %v77_v7, 2  ;;  %v92_v31 = vor.u32 %v91_v22, %v87_v11  ;;  %v262_v32 = vor.u32 %v261_v23, %v260_v20  ;;  %v265_v33 = vrot.slane %v263_v24, 1  ;;  %516 = vmatprep.subr.bf16.mxu0 %v1163_v0  ;;  %v1070_v51 = vld [vmem:[#allocation2 + $0x18] sm:$0xff]   ;;  %v1072_v53 = vld [vmem:[#allocation2 + $0x20] sm:$0xff]   ;;  %v1074_v55 = vld [vmem:[#allocation2 + $0x28] sm:$0xff]   ;;  %s804_s7 = sshll.u32 %s1169_s6, 4  ;;  %s805_s7 = int_to_ptr.vmem [resolvable:$true] %s804_s7 }
  0x30   :  { %v85_v30 = vsel %vm73_vm1, %v80_v21, %v84_v17  ;;  %111 = vrot.lane.b32.xlu1 %v108_v26, %s1158_s28  ;;  %v254_v35 = vshrl.u32 %v1235_v2, 16  ;;  %v257_v36 = vrot.slane %v82_v8, 2  ;;  %v419_v44 = vrot.slane %v1230_v1, 2  ;;  %v1071_v56 = vld [vmem:[#allocation2 + $0xd0] sm:$0xff]   ;;  %v1073_v58 = vld [vmem:[#allocation2 + $0xd8] sm:$0xff]   ;;  %v1075_v59 = vld [vmem:[#allocation2 + $0xe0] sm:$0xff]   ;;  %p1134_p3 = scmp.lt.s32.totalorder %s805_s7, %s805_s7 }
  0x31   :  { %98 = vrot.lane.b32.xlu0 %v85_v30, %s1164_s0  ;;  %v97_v37 = vsel %vm73_vm1, %v92_v31, %v96_v27  ;;  %v267_v38 = vor.u32 %v266_v28, %v265_v33  ;;  %v253_v40 = vor.u32 %v252_v29, %v251_v15  ;;  %v420_v47 = vrot.slane %v1235_v2, 2  ;;  %920 = vmatpush3.bf16.msra.mxu1 %v1066_v42  ;;  %v1076_v57 = vld [vmem:[#allocation2 + $0x50] sm:$0xff]   ;;  %v1077_v60 = vld [vmem:[#allocation2 + $0xe8] sm:$0xff]   ;;  %v1078_v8 = vld [vmem:[#allocation2 + $0x58] sm:$0xff]   ;;  %s1129_s8 = scalar_lea.vmem %s805_s7, 32 }
  0x32   :  { %v256_v41 = vrot.slane %v254_v35, 1  ;;  %517 = vmatpush1.bf16.msra.mxu0 %v1063_v39  ;;  %vm113_vm4 = vcmask 261120   ;;  %921 = vmatprep.subr.bf16.mxu1 %v1068_v46  ;;  %vm118_vm5 = vcmask 523264   ;;  %vm171_vm6 = vcmask 785408   ;;  %v1079_v13 = vld [vmem:[#allocation2 + $0x60] sm:$0xff]   ;;  %v1081_v15 = vld [vmem:[#allocation2 + $0x70] sm:$0xff]   ;;  %p1130_p2 = scmp.ne.s32.totalorder %s805_s7, %s1129_s8  ;;  %p1135_p4 = scmp.lt.s32.totalorder %s1129_s8, %s1129_s8 }
  0x33   :  { %v268_v43 = vsel %vm250_vm2, %v262_v32, %v267_v38  ;;  %518 = vmatprep.subr.bf16.mxu0 %v1163_v0  ;;  %v421_v50 = vsel %vm225_vm3, %v419_v44, %v420_v47  ;;  %v422_v5 = vrot.slane %v1240_v3, 2  ;;  %v423_v6 = vrot.slane %v1250_v9, 2  ;;  %v1080_v9 = vld [vmem:[#allocation2 + $0x68] sm:$0xff]   ;;  %v1082_v16 = vld [vmem:[#allocation2 + $0x78] sm:$0xff]   ;;  %v1083_v17 = vld [vmem:[#allocation2 + $0x80] sm:$0xff]  }
  0x34   :  { %271 = vrot.lane.b32.xlu1 %v268_v43, %s1165_s27  ;;  %v258_v45 = vor.u32 %v257_v36, %v256_v41  ;;  %844 = vmatprep.mubr.msk.bf16.mxu0 %vm113_vm4, %v421_v50  ;;  %v1084_v18 = vld [vmem:[#allocation2 + $0x88] sm:$0xff]   ;;  %v634_v19 = vld [vmem:[#allocation5 + $0x100] sm:$0xff]  ;;  %v635_v20 = vld [vmem:[#allocation5 + $0x108] sm:$0xff]  ;;  %v1166_v22 = vmov 0.0|0.0   ;;  %vm1167_vm7 = vmmov 0   ;;  %vm561_vm8 = vcmask 1043456   ;;  %p1136_p5 = por %p1135_p4, %p1134_p3 }
  0x35   :  { %100 = vrot.lane.b32.xlu0 %v97_v37, %s1164_s0  ;;  %922 = vmatpush3.bf16.msra.mxu1 %v1068_v46  ;;  %v1021_v21 = vpack.c.bf16 %v635_v20, %v634_v19  ;;  %v636_v23 = vld [vmem:[#allocation5 + $0x110] sm:$0xff]  ;;  %v637_v24 = vld [vmem:[#allocation5 + $0x118] sm:$0xff]  ;;  %v638_v26 = vld [vmem:[#allocation5 + $0x120] sm:$0xff]  ;;  %vm589_vm9 = vcmask 1041409   ;;  %vm393_vm10 = vcmask 1044480  }
  0x36   :  { %v259_v49 = vsel %vm250_vm2, %v253_v40, %v258_v45  ;;  %519 = vmatpush1.bf16.msra.mxu0 %v1065_v48  ;;  %923 = vmatprep.subr.bf16.mxu1 %v1070_v51  ;;  %v1024_v25 = vpack.c.bf16 %v637_v24, %v636_v23  ;;  %v639_v27 = vld [vmem:[#allocation5 + $0x128] sm:$0xff]  ;;  %v640_v29 = vld [vmem:[#allocation5 + $0x130] sm:$0xff]  ;;  %v641_v30 = vld [vmem:[#allocation5 + $0x138] sm:$0xff]  ;;  %p1137_p6 = pnand %p1136_p5, %p1130_p2 }
  0x37   :  { %520 = vmatprep.subr.bf16.mxu0 %v1163_v0  ;;  %v1027_v28 = vpack.c.bf16 %v639_v27, %v638_v26  ;;  %v1030_v31 = vpack.c.bf16 %v641_v30, %v640_v29  ;;  %v642_v32 = vld [vmem:[#allocation5 + $0x140] sm:$0xff]  ;;  %v643_v33 = vld [vmem:[#allocation5 + $0x148] sm:$0xff]  ;;  %v644_v37 = vld [vmem:[#allocation5 + $0x150] sm:$0xff] }
  0x38   :  { %v1033_v34 = vpack.c.bf16 %v643_v33, %v642_v32  ;;  %v618_v35 = vld [vmem:[#allocation5 + $0x80] sm:$0xff]  ;;  %v619_v36 = vld [vmem:[#allocation5 + $0x88] sm:$0xff]  ;;  %v645_v39 = vld [vmem:[#allocation5 + $0x158] sm:$0xff]  ;;  %v242_v32 = vlaneseq }
  0x39   :  { %269 = vrot.lane.b32.xlu0 %v259_v49, %s1165_s27  ;;  %924 = vmatpush3.bf16.msra.mxu1 %v1070_v51  ;;  %v988_v38 = vpack.c.bf16 %v619_v36, %v618_v35  ;;  %v602_v40 = vld [vmem:[#allocation5] sm:$0xff]  ;;  %v603_v41 = vld [vmem:[#allocation5 + $0x8] sm:$0xff]  ;;  %v1036_v42 = vpack.c.bf16 %v645_v39, %v644_v37  ;;  %v620_v44 = vld [vmem:[#allocation5 + $0x90] sm:$0xff] }
  0x3a   :  { %521 = vmatpush1.bf16.msra.mxu0 %v1067_v52  ;;  %925 = vmatprep.subr.bf16.mxu1 %v1072_v53  ;;  %v990_v43 = vpack.c.bf16 %v603_v41, %v602_v40  ;;  %v621_v45 = vld [vmem:[#allocation5 + $0x98] sm:$0xff]  ;;  %v646_v46 = vld [vmem:[#allocation5 + $0x160] sm:$0xff]  ;;  %v647_v48 = vld [vmem:[#allocation5 + $0x168] sm:$0xff] }
  0x3b   :  { %522 = vmatprep.subr.bf16.mxu0 %v1163_v0  ;;  %v992_v47 = vpack.c.bf16 %v621_v45, %v620_v44  ;;  %v604_v49 = vld [vmem:[#allocation5 + $0x10] sm:$0xff]  ;;  %v605_v50 = vld [vmem:[#allocation5 + $0x18] sm:$0xff]  ;;  %v1039_v51 = vpack.c.bf16 %v647_v48, %v646_v46  ;;  %v614_v20 = vld [vmem:[#allocation5 + $0x60] sm:$0xff] }
  0x3c   :  { %v994_v52 = vpack.c.bf16 %v605_v50, %v604_v49  ;;  %v632_v23 = vld [vmem:[#allocation5 + $0xf0] sm:$0xff]  ;;  %v633_v24 = vld [vmem:[#allocation5 + $0xf8] sm:$0xff] }
  0x3d   :  { %926 = vmatpush3.bf16.msra.mxu1 %v1072_v53  ;;  %v622_v53 = vld [vmem:[#allocation5 + $0xa0] sm:$0xff]  ;;  %v1016_v26 = vpack.c.bf16 %v633_v24, %v632_v23  ;;  %v617_v27 = vld [vmem:[#allocation5 + $0x78] sm:$0xff] }
  0x3e   :  { %523 = vmatpush1.bf16.msra.mxu0 %v1069_v54  ;;  %927 = vmatprep.subr.bf16.mxu1 %v1074_v55  ;;  %v623_v54 = vld [vmem:[#allocation5 + $0xa8] sm:$0xff] }
  0x3f   :  { %524 = vmatprep.subr.bf16.mxu0 %v1163_v0 }
  0x41   :  { %928 = vmatpush3.bf16.msra.mxu1 %v1074_v55  ;;  %v648_v55 = vld [vmem:[#allocation5 + $0x170] sm:$0xff] }
  0x42   :  { %525 = vmatpush1.bf16.msra.mxu0 %v1071_v56  ;;  %933 = vmatprep.subr.bf16.mxu1 %v1076_v57  ;;  %v996_v56 = vpack.c.bf16 %v623_v54, %v622_v53  ;;  %v56_v53 = vld [vmem:[%s1324_s2] sm:$0x7] }
  0x43   :  { %526 = vmatprep.subr.bf16.mxu0 %v1163_v0 }
  0x46   :  { %527 = vmatpush1.bf16.msra.mxu0 %v1073_v58  ;;  %v606_v58 = vld [vmem:[#allocation5 + $0x20] sm:$0xff] }
  0x47   :  { %528 = vmatprep.subr.bf16.mxu0 %v1163_v0 }
  0x4a   :  { %529 = vmatpush1.bf16.msra.mxu0 %v1075_v59  ;;  %v607_v59 = vld [vmem:[#allocation5 + $0x28] sm:$0xff] }
  0x4b   :  { %530 = vmatprep.subr.bf16.mxu0 %v1163_v0 }
  0x4e   :  { %531 = vmatpush1.bf16.msra.mxu0 %v1077_v60 }
  0x4f   :  { %1020 = vmatprep.subr.bf16.mxu0 %v1166_v22 }
  0x9e   :  { %v110_v61 = vpop.permute.xlu1 %109 }
  0xa2   :  { %v112_v7 = vpop.permute.xlu1 %111 }
  0xa3   :  { %v99_v62 = vpop.permute.xlu0 %98 }
  0xa4   :  { %v115_v63 = vsel %vm113_vm4, %v1230_v1, %v99_v62  ;;  %v424_v1 = vsel %vm225_vm3, %v422_v5, %v423_v6  ;;  %v624_v62 = vld [vmem:[#allocation5 + $0xb0] sm:$0xff]  ;;  %v609_v6 = vld [vmem:[#allocation5 + $0x38] sm:$0xff] }
  0xa5   :  { %v120_v2 = vsel %vm118_vm5, %v115_v63, %v110_v61  ;;  %v998_v61 = vpack.c.bf16 %v607_v59, %v606_v58  ;;  %v625_v63 = vld [vmem:[#allocation5 + $0xb8] sm:$0xff]  ;;  %v608_v5 = vld [vmem:[#allocation5 + $0x30] sm:$0xff] }
  0xa6   :  { %929 = vmatprep.mubr.msk.bf16.mxu1 %vm171_vm6, %v120_v2 }
  0xa7   :  { %v101_v4 = vpop.permute.xlu0 %100 }
  0xa8   :  { %v117_v0 = vsel %vm113_vm4, %v1240_v3, %v101_v4  ;;  %v272_v3 = vpop.permute.xlu1 %271  ;;  %v1000_v4 = vpack.c.bf16 %v625_v63, %v624_v62 }
  0xa9   :  { %v122_v10 = vsel %vm118_vm5, %v117_v0, %v112_v7  ;;  %v1002_v7 = vpack.c.bf16 %v609_v6, %v608_v5  ;;  %v626_v0 = vld [vmem:[#allocation5 + $0xc0] sm:$0xff] }
  0xaa   :  { %930 = vmatmul.mubr.msk.bf16.vlgmr.msra.gmra.mrb[0].mxu1 %vm171_vm6, %v122_v10  ;;  %v277_v14 = vsel %vm171_vm6, %v122_v10, %v272_v3 }
  0xab   :  { %934 = vmatpush3.bf16.msra.mxu1 %v1076_v57  ;;  %v270_v11 = vpop.permute.xlu0 %269  ;;  %v649_v57 = vld [vmem:[#allocation5 + $0x178] sm:$0xff] }
  0xac   :  { %935 = vmatprep.subr.bf16.mxu1 %v1078_v8  ;;  %v274_v12 = vsel %vm171_vm6, %v120_v2, %v270_v11  ;;  %v1042_v60 = vpack.c.bf16 %v649_v57, %v648_v55  ;;  %v1168_v2 = vmov 0.0   ;;  %v610_v11 = vld [vmem:[#allocation5 + $0x40] sm:$0xff] }
  0xad   :  { %949 = vmatprep.mubr.bf16.mxu1 %v274_v12  ;;  %545 = vmatmul.mubr.bf16.vlgmr.msra.gmra.mrb[0].mxu0 %v274_v12 }
  0xae   :  { %845 = vmatprep.mubr.msk.bf16.mxu0 %vm113_vm4, %v424_v1  ;;  %1022 = vmatpush3.bf16.msra.mxu0 %v1021_v21  ;;  %v611_v1 = vld [vmem:[#allocation5 + $0x48] sm:$0xff] }
  0xaf   :  { %936 = vmatpush3.bf16.msra.mxu1 %v1078_v8  ;;  %1023 = vmatprep.subr.bf16.mxu0 %v1166_v22  ;;  %v627_v8 = vld [vmem:[#allocation5 + $0xc8] sm:$0xff]  ;;  %v1006_v12 = vpack.c.bf16 %v611_v1, %v610_v11 }
  0xb0   :  { %937 = vmatprep.subr.bf16.mxu1 %v1079_v13  ;;  %v1004_v10 = vpack.c.bf16 %v627_v8, %v626_v0  ;;  %v615_v21 = vld [vmem:[#allocation5 + $0x68] sm:$0xff] }
  0xb2   :  { %1025 = vmatpush3.bf16.msra.mxu0 %v1024_v25  ;;  %v616_v25 = vld [vmem:[#allocation5 + $0x70] sm:$0xff] }
  0xb3   :  { %938 = vmatpush3.bf16.msra.mxu1 %v1079_v13  ;;  %1026 = vmatprep.subr.bf16.mxu0 %v1166_v22  ;;  %v628_v13 = vld [vmem:[#allocation5 + $0xd0] sm:$0xff] }
  0xb4   :  { %939 = vmatprep.subr.bf16.mxu1 %v1080_v9 }
  0xb5   :  { %553 = vmatmul.mubr.bf16.gmra.mrb[4].mxu0 %v277_v14 }
  0xb6   :  { %1028 = vmatpush3.bf16.msra.mxu0 %v1027_v28  ;;  %985 = vmatprep.mubr.msk.f32.mxu0 %vm1167_vm7, %v1168_v2  ;;  %v1018_v28 = vpack.c.bf16 %v617_v27, %v616_v25 }
  0xb7   :  { %940 = vmatpush3.bf16.msra.mxu1 %v1080_v9  ;;  %1029 = vmatprep.subr.bf16.mxu0 %v1166_v22  ;;  %v629_v9 = vld [vmem:[#allocation5 + $0xd8] sm:$0xff] }
  0xb8   :  { %941 = vmatprep.subr.bf16.mxu1 %v1081_v15  ;;  %v1008_v3 = vpack.c.bf16 %v629_v9, %v628_v13 }
  0xba   :  { %1031 = vmatpush3.bf16.msra.mxu0 %v1030_v31 }
  0xbb   :  { %942 = vmatpush3.bf16.msra.mxu1 %v1081_v15  ;;  %1032 = vmatprep.subr.bf16.mxu0 %v1166_v22  ;;  %v613_v15 = vld [vmem:[#allocation5 + $0x58] sm:$0xff] }
  0xbc   :  { %943 = vmatprep.subr.bf16.mxu1 %v1082_v16 }
  0xbe   :  { %1034 = vmatpush3.bf16.msra.mxu0 %v1033_v34 }
  0xbf   :  { %944 = vmatpush3.bf16.msra.mxu1 %v1082_v16  ;;  %1035 = vmatprep.subr.bf16.mxu0 %v1166_v22 }
  0xc0   :  { %945 = vmatprep.subr.bf16.mxu1 %v1083_v17 }
  0xc2   :  { %1037 = vmatpush3.bf16.msra.mxu0 %v1036_v42  ;;  %v1294_v42 = vshrl.u32 %v242_v32, 7 }
  0xc3   :  { %946 = vmatpush3.bf16.msra.mxu1 %v1083_v17  ;;  %1038 = vmatprep.subr.bf16.mxu0 %v1166_v22  ;;  %v630_v17 = vld [vmem:[#allocation5 + $0xe0] sm:$0xff] }
  0xc4   :  { %947 = vmatprep.subr.bf16.mxu1 %v1084_v18 }
  0xc6   :  { %1040 = vmatpush3.bf16.msra.mxu0 %v1039_v51  ;;  %v244_v51 = vsub.s32 0, %v1294_v42 }
  0xc7   :  { %948 = vmatpush3.bf16.msra.mxu1 %v1084_v18  ;;  %1041 = vmatprep.subr.bf16.mxu0 %v1166_v22  ;;  %v631_v18 = vld [vmem:[#allocation5 + $0xe8] sm:$0xff]  ;;  %v1014_v22 = vpack.c.bf16 %v615_v21, %v614_v20 }
  0xc8   :  { %989 = vmatprep.subr.bf16.mxu1 %v988_v38  ;;  %v1012_v19 = vpack.c.bf16 %v631_v18, %v630_v17  ;;  %v245_v2 = vrot.slane %v56_v53, %v244_v51 }
  0xca   :  { %950 = vmatmul.mubr.bf16.vlgmr.msra.gmra.mrb[4].mxu1 %v277_v14  ;;  %1043 = vmatpush3.bf16.msra.mxu0 %v1042_v60  ;;  %v612_v14 = vld [vmem:[#allocation5 + $0x50] sm:$0xff] }
  0xcb   :  { %991 = vmatpush3.bf16.msra.mxu1 %v990_v43  ;;  %v1010_v16 = vpack.c.bf16 %v613_v15, %v612_v14 }
  0xcc   :  { %993 = vmatprep.subr.bf16.mxu1 %v992_v47 }
  0xcf   :  { %995 = vmatpush3.bf16.msra.mxu1 %v994_v52 }
  0xd0   :  { %997 = vmatprep.subr.bf16.mxu1 %v996_v56 }
  0xd3   :  { %999 = vmatpush3.bf16.msra.mxu1 %v998_v61 }
  0xd4   :  { %1001 = vmatprep.subr.bf16.mxu1 %v1000_v4 }
  0xd7   :  { %1003 = vmatpush3.bf16.msra.mxu1 %v1002_v7 }
  0xd8   :  { %1005 = vmatprep.subr.bf16.mxu1 %v1004_v10 }
  0xdb   :  { %1007 = vmatpush3.bf16.msra.mxu1 %v1006_v12  ;;  %v580_v12 = vsub.s32 2, %v1294_v42 }
  0xdc   :  { %1009 = vmatprep.subr.bf16.mxu1 %v1008_v3 }
  0xdf   :  { %1011 = vmatpush3.bf16.msra.mxu1 %v1010_v16 }
  0xe0   :  { %1013 = vmatprep.subr.bf16.mxu1 %v1012_v19  ;;  %v581_v19 = vrot.slane %v56_v53, %v580_v12 }
  0xe3   :  { %1015 = vmatpush3.bf16.msra.mxu1 %v1014_v22 }
  0xe4   :  { %1017 = vmatprep.subr.bf16.mxu1 %v1016_v26 }
  0xe7   :  { %1019 = vmatpush3.bf16.msra.mxu1 %v1018_v28 }
 0x17d   :  { %v931_v29 = vpop.f32.mrb[0].mxu1 }
 0x17e   :  { %v210_v30 = vpop.f32.mrb[1].mxu1 }
 0x17f   :  { %v932_v31 = vpop.f32.mrb[2].mxu1 }
 0x180   :  { %v234_v33 = vsel %vm225_vm3, %v932_v31, -inf  ;;  %v213_v34 = vpop.f32.mrb[3].mxu1  ;;  %v546_v35 = vpop.f32.mrb[0].mxu0 }
 0x181   :  { %v235_v36 = vmax.f32 %v931_v29, %v234_v33  ;;  %v226_v37 = vsel %vm225_vm3, %v213_v34, -inf  ;;  %v548_v38 = vpop.f32.mrb[1].mxu0 }
 0x182   :  { %v227_v39 = vmax.f32 %v210_v30, %v226_v37  ;;  %v549_v40 = vpop.f32.mrb[2].mxu0 }
 0x183   :  { %v236_v41 = vrot.slane %v235_v36, 4  ;;  %v562_v43 = vsel %vm561_vm8, %v549_v40, -inf  ;;  %v551_v44 = vpop.f32.mrb[3].mxu0 }
 0x184   :  { %v228_v45 = vrot.slane %v227_v39, 4  ;;  %v563_v46 = vmax.f32 %v546_v35, %v562_v43 }
 0x185   :  { %v237_v47 = vmax.f32 %v235_v36, %v236_v41  ;;  %v412_v41 = vsub.s32 1, %v1294_v42 }
 0x186   :  { %v229_v48 = vmax.f32 %v227_v39, %v228_v45  ;;  %v564_v49 = vrot.slane %v563_v46, 4 }
 0x187   :  { %v238_v50 = vrot.slane %v237_v47, 2 }
 0x188   :  { %v230_v52 = vrot.slane %v229_v48, 2  ;;  %v565_v54 = vmax.f32 %v563_v46, %v564_v49  ;;  %v554_v55 = vpop.f32.mrb[4].mxu0 }
 0x189   :  { %v239_v56 = vmax.f32 %v237_v47, %v238_v50  ;;  %v556_v57 = vpop.f32.mrb[5].mxu0  ;;  %v413_v47 = vrot.slane %v56_v53, %v412_v41 }
 0x18a   :  { %v231_v58 = vmax.f32 %v229_v48, %v230_v52  ;;  %v566_v59 = vrot.slane %v565_v54, 2  ;;  %v557_v60 = vpop.f32.mrb[6].mxu0 }
 0x18b   :  { %v240_v61 = vrot.slane %v239_v56, 1  ;;  %v570_v62 = vsel %vm561_vm8, %v557_v60, -inf  ;;  %v559_v63 = vpop.f32.mrb[7].mxu0  ;;  %v846_v60 = vld [vmem:[%s1326_s4] ss:$0 sm:$0xff] }
 0x18c   :  { %v232_v4 = vrot.slane %v231_v58, 1  ;;  %v571_v5 = vmax.f32 %v554_v55, %v570_v62  ;;  %v567_v0 = vmax.f32 %v565_v54, %v566_v59 }
 0x18d   :  { %v241_v6 = vmax.f32 %v239_v56, %v240_v61 }
 0x18e   :  { %v233_v7 = vmax.f32 %v231_v58, %v232_v4  ;;  %v572_v8 = vrot.slane %v571_v5, 4  ;;  %v568_v9 = vrot.slane %v567_v0, 1 }
 0x18f   :  { %v247_v10 = vadd.f32 %v245_v2, %v241_v6 }
 0x190   :  { %v573_v11 = vmax.f32 %v571_v5, %v572_v8  ;;  %v246_v1 = vadd.f32 %v245_v2, %v233_v7  ;;  %v569_v18 = vmax.f32 %v567_v0, %v568_v9 }
 0x191   :  { %v249_v13 = vmax.f32 %v247_v10, 0.0 }
 0x192   :  { %v574_v3 = vrot.slane %v573_v11, 2  ;;  %v248_v14 = vmax.f32 %v246_v1, 0.0  ;;  %v582_v22 = vadd.f32 %v581_v19, %v569_v18 }
 0x193   :  { %v588_v15 = vrot.slane %v249_v13, 7 }
 0x194   :  { %v575_v16 = vmax.f32 %v573_v11, %v574_v3  ;;  %v584_v26 = vmax.f32 %v582_v22, 0.0 }
 0x195   :  { %v590_v17 = vsel %vm589_vm9, %v588_v15, %v248_v14 }
 0x196   :  { %v576_v20 = vrot.slane %v575_v16, 1 }
 0x198   :  { %v577_v21 = vmax.f32 %v575_v16, %v576_v20 }
 0x19a   :  { %v583_v23 = vadd.f32 %v581_v19, %v577_v21 }
 0x19c   :  { %v585_v24 = vmax.f32 %v583_v23, 0.0 }
 0x19d   :  { %v951_v25 = vpop.f32.mrb[4].mxu1 }
 0x19e   :  { %v378_v27 = vpop.f32.mrb[5].mxu1  ;;  %v599_v28 = vrot.slane %v585_v24, 7 }
 0x19f   :  { %v952_v29 = vpop.f32.mrb[6].mxu1 }
 0x1a0   :  { %v402_v30 = vsel %vm393_vm10, %v952_v29, -inf  ;;  %v381_v31 = vpop.f32.mrb[7].mxu1  ;;  %v600_v32 = vsel %vm589_vm9, %v599_v28, %v584_v26 }
 0x1a1   :  { %v403_v33 = vmax.f32 %v951_v25, %v402_v30  ;;  %v394_v34 = vsel %vm393_vm10, %v381_v31, -inf  ;;  %986 = vmatmul.mubr.f32.vlgmr.msra.gmra.mrb[8].mxu0 %v600_v32 }
 0x1a2   :  { %v395_v35 = vmax.f32 %v378_v27, %v394_v34 }
 0x1a3   :  { %v404_v36 = vrot.slane %v403_v33, 4 }
 0x1a4   :  { %v396_v37 = vrot.slane %v395_v35, 4 }
 0x1a5   :  { %v405_v38 = vmax.f32 %v403_v33, %v404_v36 }
 0x1a6   :  { %v397_v39 = vmax.f32 %v395_v35, %v396_v37 }
 0x1a7   :  { %v406_v40 = vrot.slane %v405_v38, 2 }
 0x1a8   :  { %v398_v43 = vrot.slane %v397_v39, 2 }
 0x1a9   :  { %v407_v44 = vmax.f32 %v405_v38, %v406_v40 }
 0x1aa   :  { %v399_v45 = vmax.f32 %v397_v39, %v398_v43 }
 0x1ab   :  { %v408_v46 = vrot.slane %v407_v44, 1 }
 0x1ac   :  { %v400_v48 = vrot.slane %v399_v45, 1 }
 0x1ad   :  { %v409_v49 = vmax.f32 %v407_v44, %v408_v46 }
 0x1ae   :  { %v401_v50 = vmax.f32 %v399_v45, %v400_v48 }
 0x1af   :  { %v415_v51 = vadd.f32 %v413_v47, %v409_v49 }
 0x1b0   :  { %v414_v52 = vadd.f32 %v413_v47, %v401_v50 }
 0x1b1   :  { %v417_v54 = vmax.f32 %v415_v51, 0.0 }
 0x1b2   :  { %v416_v55 = vmax.f32 %v414_v52, 0.0 }
 0x1b3   :  { %v594_v56 = vrot.slane %v417_v54, 7 }
 0x1b5   :  { %v595_v57 = vsel %vm589_vm9, %v594_v56, %v416_v55 }
 0x1b6   :  { %721 = vmatprep.mubr.f32.mxu1 %v595_v57 }
 0x1b7   :  { %722 = vmatmul.mubr.f32.vlgmr.msra.gmra.mrb[8].mxu1 %v590_v17 }
 0x274   :  { %v793_v58 = vpop.f32.mrb[8].mxu0 }
 0x275   :  { %v987_v59 = vpop.f32.mrb[9].mxu0 }
 0x28a   :  { %v897_v42 = vpop.f32.mrb[8].mxu1 }
 0x28b   :  { %v898_v53 = vpop.f32.mrb[9].mxu1 }
 0x28c   :  { %v899_v61 = vadd.f32 %v898_v53, %v897_v42 }
 0x28e   :  { %v724_v62 = vadd.f32 %v899_v61, %v846_v60 }
 0x290   :  { %v794_v63 = vadd.f32 %v793_v58, %v724_v62 }
 0x292   :  { %797 = vst [vmem:[#allocation7] sm:$0x3] %v794_v63 }
 0x293   :  { %1140 = shalt.err (!%p1137_p6)
}
 0x294   :  { %s1141_s11 = scalar_lea.hbm %s1327_s5, 32 }
 0x295   :  { %p1142_p7 = scmp.ne.s32.totalorder %s1327_s5, %s1141_s11  ;;  %p1145_p8 = scmp.lt.u32.totalorder %s1141_s11, %s1327_s5 }
 0x297   :  { %p1147_p9 = pnand %p1145_p8, %p1142_p7 }
 0x299   :  { %1150 = shalt.err (!%p1147_p9)
}
 0x29a   :  { %807 = dma.vmem_to_hbm [thread:$0]  %s805_s7, 32, %s1327_s5, [#allocation4]  }
 0x29b   :  { %1155 = dma.done.wait [#allocation4], 32  }
 0x29c   :  { %1156 = vsyncadd [#allocation4], 4294967264 }
 0x29d   :  { %811 = vsyncpa [#allocation3], 1 }
 0x29e   :  { %812 = vsyncpa [#allocation6], 1 }
 0x29f   :  { %813 = vsyncpa [#allocation4], 1 }

</bundles_post_ra>
